<compile_context>
chip_gen: v7x
topology: tpu7x:2x2x1
jax: 0.10.0
libtpu: 0.0.40
codegen_flags: <defaults>
</compile_context>

<pallas_src>
import functools

import jax
import jax.numpy as jnp
from jax.experimental import pallas as pl
from jax.experimental.pallas import tpu as pltpu


def _round_up(x, m):
    return (x + m - 1) // m * m


def perceptron_kernel(x_ref, w1_ref, b1_ref, w2_ref, b2_ref, o_ref):
    # (TILE_B, IN) @ (IN, H) -> f32 accumulation on the MXU.
    h = jnp.dot(x_ref[...], w1_ref[...], preferred_element_type=jnp.float32)
    h = h + b1_ref[...]                                   # (TILE_B, H) + (1, H)
    # Exact sigmoid with a single EUP transcendental (tanh); the extra
    # mul/adds ride spare VALU slots.
    h = 0.5 * jnp.tanh(0.5 * h) + 0.5
    # (TILE_B, H) @ (H, O_p) -> f32 accumulation on the MXU.
    y = jnp.dot(h.astype(w2_ref.dtype), w2_ref[...],
                preferred_element_type=jnp.float32)
    o_ref[...] = (y + b2_ref[...]).astype(o_ref.dtype)    # (TILE_B, O_p)


@functools.partial(
    jax.jit,
    static_argnames=("tile_b", "vmem_limit", "use_bf16", "single_buffer_weights"))
def _perceptron_call(x, w1, b1, w2, b2, *, tile_b, vmem_limit, use_bf16,
                     single_buffer_weights):
    B, IN = x.shape
    IN_w, H = w1.shape
    H_w, O = w2.shape
    assert IN == IN_w and H == H_w and b1.shape == (H,) and b2.shape == (O,)
    out_dtype = x.dtype

    # Lane-dense output padding only (kept: masked vs unmasked vst is a proven
    # lever).  IN and H stay unpadded; full-extent block dims are legal.
    O_p = _round_up(O, 128)

    mxu_dtype = jnp.bfloat16 if use_bf16 else x.dtype
    x_c = x.astype(mxu_dtype)
    w1_c = w1.astype(mxu_dtype)
    w2_p = jnp.pad(w2, ((0, 0), (0, O_p - O))).astype(mxu_dtype)
    b1_r = b1.astype(jnp.float32).reshape(1, H)
    b2_p = jnp.pad(b2.astype(jnp.float32), ((0, O_p - O),)).reshape(1, O_p)

    # Batch tiling. A single tile equal to the full batch needs no padding;
    # otherwise TILE_B is a multiple of 8 and the batch is padded to n_tiles.
    if tile_b >= B:
        TILE_B, B_p = B, B
    else:
        TILE_B = _round_up(min(tile_b, B), 8)
        B_p = _round_up(B, TILE_B)
    n_tiles = B_p // TILE_B
    if B_p != B:
        x_c = jnp.pad(x_c, ((0, B_p - B), (0, 0)))

    in_itemsize = jnp.dtype(mxu_dtype).itemsize
    cost = pl.CostEstimate(
        flops=2 * B_p * (IN * H + H * O_p),
        transcendentals=B_p * H,
        bytes_accessed=(x_c.size * in_itemsize
                        + B_p * O_p * jnp.dtype(out_dtype).itemsize
                        + (w1_c.size + w2_p.size) * in_itemsize
                        + (b1_r.size + b2_p.size) * 4),
    )

    # Constant-index weight/bias blocks: single-buffer them if supported.
    resident_mode = pl.Buffered(1) if single_buffer_weights else None

    def resident_spec(shape):
        if resident_mode is None:
            return pl.BlockSpec(shape, lambda i: (0, 0))
        return pl.BlockSpec(shape, lambda i: (0, 0), pipeline_mode=resident_mode)

    out_p = pl.pallas_call(
        perceptron_kernel,
        out_shape=jax.ShapeDtypeStruct((B_p, O_p), out_dtype),
        grid_spec=pltpu.PrefetchScalarGridSpec(
            num_scalar_prefetch=0,
            grid=(n_tiles,),
            in_specs=[
                pl.BlockSpec((TILE_B, IN), lambda i: (i, 0)),  # x: batch-tiled
                resident_spec((IN, H)),                        # w1: resident
                resident_spec((1, H)),                         # b1: resident
                resident_spec((H, O_p)),                       # w2: resident
                resident_spec((1, O_p)),                       # b2: resident
            ],
            out_specs=pl.BlockSpec((TILE_B, O_p), lambda i: (i, 0)),
        ),
        compiler_params=pltpu.CompilerParams(
            dimension_semantics=("parallel",),   # batch tiles are independent
            vmem_limit_bytes=int(vmem_limit),
        ),
        cost_estimate=cost,
    )(x_c, w1_c, b1_r, w2_p, b2_p)

    return out_p[:B, :O]


def _tpu_vmem_capacity_bytes():
    try:
        return int(pltpu.get_tpu_info().vmem_capacity_bytes)
    except Exception:
        return 128 * 1024 * 1024   # v5e/v6e default if the query is unavailable


def _vmem_footprint(tile_b, IN, H, O_p, in_itemsize):
    return (2 * tile_b * IN * in_itemsize          # x, double-buffered
            + 2 * tile_b * O_p * 4                 # out (f32), double-buffered
            + (IN * H + H * O_p) * in_itemsize     # resident weights (1 buffer)
            + (H + O_p) * 4                        # resident biases (f32)
            + 4 * tile_b * max(H, O_p) * 4)        # f32 activation temporaries


def perceptron_forward(x, w1, b1, w2, b2, *, tile_b=None, use_bf16=True):
    """Generation-aware wrapper: picks TILE_B / vmem limit, then calls the kernel."""
    B, IN = x.shape
    H = w1.shape[1]
    O = w2.shape[1]
    O_p = _round_up(O, 128)
    in_itemsize = 2 if use_bf16 else jnp.dtype(x.dtype).itemsize

    vmem_cap = _tpu_vmem_capacity_bytes()
    small_vmem = vmem_cap <= 80 * 1024 * 1024                 # v7x: 64 MiB / TC
    vmem_budget = (40 if small_vmem else 100) * 1024 * 1024

    if tile_b is None:
        tile_b = 512 if small_vmem else 1024                  # v5e/v6e take bigger tiles
    tile_b = max(8, min(int(tile_b), _round_up(B, 8)))

    # Shrink the batch tile until the pipeline fits the per-generation budget.
    while tile_b > 8 and _vmem_footprint(tile_b, IN, H, O_p, in_itemsize) > vmem_budget:
        tile_b = max(8, _round_up(tile_b // 2, 8))

    # v7x megacore: make sure there are >= 2 batch tiles to shard across the
    # two TensorCores (no effect on single-TC v5e/v6e, skipped for tiny B).
    if small_vmem and B >= 16 and tile_b >= B:
        tile_b = _round_up((B + 1) // 2, 8)

    vmem_limit = int(min(max(2 * _vmem_footprint(tile_b, IN, H, O_p, in_itemsize),
                             16 * 1024 * 1024),
                         vmem_budget))

    kwargs = dict(tile_b=tile_b, vmem_limit=vmem_limit, use_bf16=use_bf16)
    try:
        return _perceptron_call(x, w1, b1, w2, b2,
                                single_buffer_weights=True, **kwargs)
    except Exception:
        # Fallback for jax versions that reject pl.Buffered(1): identical math,
        # default double-buffered weight specs.
        return _perceptron_call(x, w1, b1, w2, b2,
                                single_buffer_weights=False, **kwargs)


if __name__ == "__main__":
    # Small shapes consistent with Perceptron(in_features, hidden_features, out_features).
    batch, in_features, hidden_features, out_features = 2, 4, 32, 8

    key = jax.random.PRNGKey(0)
    kx, kw1, kb1, kw2, kb2 = jax.random.split(key, 5)

    x = jax.random.normal(kx, (batch, in_features), dtype=jnp.float32)
    # Deterministic "randn" parameter init, same shapes as the PyTorch module.
    w1 = jax.random.normal(kw1, (in_features, hidden_features), dtype=jnp.float32)
    b1 = jax.random.normal(kb1, (hidden_features,), dtype=jnp.float32)
    w2 = jax.random.normal(kw2, (hidden_features, out_features), dtype=jnp.float32)
    b2 = jax.random.normal(kb2, (out_features,), dtype=jnp.float32)

    out = perceptron_forward(x, w1, b1, w2, b2)
    jax.block_until_ready(out)
    assert out.shape == (batch, out_features)

    # 1) Tight check against a reference that uses the same bf16 MXU inputs
    #    (f32 accumulation, f32 sigmoid) -> validates the kernel math exactly.
    xb, w1b, w2b = (a.astype(jnp.bfloat16) for a in (x, w1, w2))
    h_ref = jnp.dot(xb, w1b, preferred_element_type=jnp.float32) + b1
    h_ref = 0.5 * jnp.tanh(0.5 * h_ref) + 0.5
    ref_bf16 = jnp.dot(h_ref.astype(jnp.bfloat16), w2b,
                       preferred_element_type=jnp.float32) + b2
    assert jnp.allclose(out, ref_bf16, atol=1e-4, rtol=1e-4), (
        f"max abs err vs bf16 ref {jnp.max(jnp.abs(out - ref_bf16))}")

    # 2) Sanity check against the full-f32 PyTorch semantics (tolerance covers
    #    only the bf16 input rounding; the sigmoid itself is exact now).
    ref_f32 = jax.nn.sigmoid(x @ w1 + b1) @ w2 + b2
    assert jnp.allclose(out, ref_f32, atol=5e-2, rtol=5e-2), (
        f"max abs err vs f32 ref {jnp.max(jnp.abs(out - ref_f32))}")

    print("KERNEL_OK")
</pallas_src>

<mosaic_0001>
module attributes {stable_mosaic.version = 11 : i64} {
  func.func @perceptron_kernel(%arg0: i32, %arg1: memref<2x4xbf16, #tpu.memory_space<vmem>>, %arg2: memref<4x32xbf16, #tpu.memory_space<vmem>>, %arg3: memref<1x32xf32, #tpu.memory_space<vmem>>, %arg4: memref<32x128xbf16, #tpu.memory_space<vmem>>, %arg5: memref<1x128xf32, #tpu.memory_space<vmem>>, %arg6: memref<2x128xf32, #tpu.memory_space<vmem>>) attributes {dimension_semantics = [#tpu.dimension_semantics<parallel>], iteration_bounds = array<i64: 1>, scalar_prefetch = 0 : i64, scratch_operands = 0 : i64, tpu.core_type = #tpu.core_type<tc>, window_params = [{transform_indices = @transform_0, window_bounds = array<i64: 2, 4>}, {pipeline_mode = #tpu.pipeline_mode<synchronous>, transform_indices = @transform_1, window_bounds = array<i64: 4, 32>}, {pipeline_mode = #tpu.pipeline_mode<synchronous>, transform_indices = @transform_2, window_bounds = array<i64: 1, 32>}, {pipeline_mode = #tpu.pipeline_mode<synchronous>, transform_indices = @transform_3, window_bounds = array<i64: 32, 128>}, {pipeline_mode = #tpu.pipeline_mode<synchronous>, transform_indices = @transform_4, window_bounds = array<i64: 1, 128>}, {transform_indices = @transform_5, window_bounds = array<i64: 2, 128>}]} {
    %c0 = arith.constant 0 : index
    %c0_0 = arith.constant 0 : index
    %0 = vector.load %arg1[%c0, %c0_0] : memref<2x4xbf16, #tpu.memory_space<vmem>>, vector<2x4xbf16>
    %c0_1 = arith.constant 0 : index
    %c0_2 = arith.constant 0 : index
    %1 = vector.load %arg2[%c0_1, %c0_2] : memref<4x32xbf16, #tpu.memory_space<vmem>>, vector<4x32xbf16>
    %cst = arith.constant dense<0.000000e+00> : vector<2x32xf32>
    %2 = tpu.matmul %0, %1, %cst {dimension_numbers = #tpu.dot_dimension_numbers<[1], [0], [0], [1], [0, 0, 1, 1], [], []>} : vector<2x4xbf16>, vector<4x32xbf16>, vector<2x32xf32> -> vector<2x32xf32>
    %c0_3 = arith.constant 0 : index
    %c0_4 = arith.constant 0 : index
    %3 = vector.load %arg3[%c0_3, %c0_4] : memref<1x32xf32, #tpu.memory_space<vmem>>, vector<1x32xf32>
    %4 = vector.broadcast %3 : vector<1x32xf32> to vector<2x32xf32>
    %5 = arith.addf %2, %4 : vector<2x32xf32>
    %cst_5 = arith.constant 5.000000e-01 : f32
    %6 = vector.broadcast %cst_5 : f32 to vector<2x32xf32>
    %7 = arith.mulf %6, %5 : vector<2x32xf32>
    %8 = math.tanh %7 : vector<2x32xf32>
    %cst_6 = arith.constant 5.000000e-01 : f32
    %9 = vector.broadcast %cst_6 : f32 to vector<2x32xf32>
    %10 = arith.mulf %9, %8 : vector<2x32xf32>
    %cst_7 = arith.constant 5.000000e-01 : f32
    %11 = vector.broadcast %cst_7 : f32 to vector<2x32xf32>
    %12 = arith.addf %10, %11 : vector<2x32xf32>
    %13 = arith.truncf %12 : vector<2x32xf32> to vector<2x32xbf16>
    %c0_8 = arith.constant 0 : index
    %c0_9 = arith.constant 0 : index
    %14 = vector.load %arg4[%c0_8, %c0_9] : memref<32x128xbf16, #tpu.memory_space<vmem>>, vector<32x128xbf16>
    %cst_10 = arith.constant dense<0.000000e+00> : vector<2x128xf32>
    %15 = tpu.matmul %13, %14, %cst_10 {dimension_numbers = #tpu.dot_dimension_numbers<[1], [0], [0], [1], [0, 0, 1, 1], [], []>} : vector<2x32xbf16>, vector<32x128xbf16>, vector<2x128xf32> -> vector<2x128xf32>
    %c0_11 = arith.constant 0 : index
    %c0_12 = arith.constant 0 : index
    %16 = vector.load %arg5[%c0_11, %c0_12] : memref<1x128xf32, #tpu.memory_space<vmem>>, vector<1x128xf32>
    %17 = vector.broadcast %16 : vector<1x128xf32> to vector<2x128xf32>
    %18 = arith.addf %15, %17 : vector<2x128xf32>
    %c0_13 = arith.constant 0 : index
    %c0_14 = arith.constant 0 : index
    %19 = vector.load %arg6[%c0_13, %c0_14] : memref<2x128xf32, #tpu.memory_space<vmem>>, vector<2x128xf32>
    tpu.vector_store %arg6[%c0_13, %c0_14], %18 {strides = array<i32>} : memref<2x128xf32, #tpu.memory_space<vmem>>, vector<2x128xf32>,
    return
  }
  func.func @transform_0(%arg0: i32) -> (i32, i32) {
    %c0_i32 = arith.constant 0 : i32
    %c0_i32_0 = arith.constant 0 : i32
    return %arg0, %c0_i32 : i32, i32
  }
  func.func @transform_1(%arg0: i32) -> (i32, i32) {
    %c0_i32 = arith.constant 0 : i32
    %c0_i32_0 = arith.constant 0 : i32
    %c0_i32_1 = arith.constant 0 : i32
    return %c0_i32, %c0_i32_0 : i32, i32
  }
  func.func @transform_2(%arg0: i32) -> (i32, i32) {
    %c0_i32 = arith.constant 0 : i32
    %c0_i32_0 = arith.constant 0 : i32
    %c0_i32_1 = arith.constant 0 : i32
    return %c0_i32, %c0_i32_0 : i32, i32
  }
  func.func @transform_3(%arg0: i32) -> (i32, i32) {
    %c0_i32 = arith.constant 0 : i32
    %c0_i32_0 = arith.constant 0 : i32
    %c0_i32_1 = arith.constant 0 : i32
    return %c0_i32, %c0_i32_0 : i32, i32
  }
  func.func @transform_4(%arg0: i32) -> (i32, i32) {
    %c0_i32 = arith.constant 0 : i32
    %c0_i32_0 = arith.constant 0 : i32
    %c0_i32_1 = arith.constant 0 : i32
    return %c0_i32, %c0_i32_0 : i32, i32
  }
  func.func @transform_5(%arg0: i32) -> (i32, i32) {
    %c0_i32 = arith.constant 0 : i32
    %c0_i32_0 = arith.constant 0 : i32
    return %arg0, %c0_i32 : i32, i32
  }
}

module attributes {stable_mosaic.version = 11 : i64} {
  func.func @perceptron_kernel(%arg0: i32, %arg1: memref<2x4xbf16, #tpu.memory_space<vmem>>, %arg2: memref<4x32xbf16, #tpu.memory_space<vmem>>, %arg3: memref<1x32xf32, #tpu.memory_space<vmem>>, %arg4: memref<32x128xbf16, #tpu.memory_space<vmem>>, %arg5: memref<1x128xf32, #tpu.memory_space<vmem>>, %arg6: memref<2x128xf32, #tpu.memory_space<vmem>>) attributes {dimension_semantics = [#tpu.dimension_semantics<parallel>], iteration_bounds = array<i64: 1>, scalar_prefetch = 0 : i64, scratch_operands = 0 : i64, tpu.core_type = #tpu.core_type<tc>, window_params = [{transform_indices = @transform_0, window_bounds = array<i64: 2, 4>}, {pipeline_mode = #tpu.pipeline_mode<synchronous>, transform_indices = @transform_1, window_bounds = array<i64: 4, 32>}, {pipeline_mode = #tpu.pipeline_mode<synchronous>, transform_indices = @transform_2, window_bounds = array<i64: 1, 32>}, {pipeline_mode = #tpu.pipeline_mode<synchronous>, transform_indices = @transform_3, window_bounds = array<i64: 32, 128>}, {pipeline_mode = #tpu.pipeline_mode<synchronous>, transform_indices = @transform_4, window_bounds = array<i64: 1, 128>}, {transform_indices = @transform_5, window_bounds = array<i64: 2, 128>}]} {
    %c0 = arith.constant 0 : index
    %c0_0 = arith.constant 0 : index
    %0 = vector.load %arg1[%c0, %c0_0] : memref<2x4xbf16, #tpu.memory_space<vmem>>, vector<2x4xbf16>
    %c0_1 = arith.constant 0 : index
    %c0_2 = arith.constant 0 : index
    %1 = vector.load %arg2[%c0_1, %c0_2] : memref<4x32xbf16, #tpu.memory_space<vmem>>, vector<4x32xbf16>
    %cst = arith.constant dense<0.000000e+00> : vector<2x32xf32>
    %2 = tpu.matmul %0, %1, %cst {dimension_numbers = #tpu.dot_dimension_numbers<[1], [0], [0], [1], [0, 0, 1, 1], [], []>} : vector<2x4xbf16>, vector<4x32xbf16>, vector<2x32xf32> -> vector<2x32xf32>
    %c0_3 = arith.constant 0 : index
    %c0_4 = arith.constant 0 : index
    %3 = vector.load %arg3[%c0_3, %c0_4] : memref<1x32xf32, #tpu.memory_space<vmem>>, vector<1x32xf32>
    %4 = vector.broadcast %3 : vector<1x32xf32> to vector<2x32xf32>
    %5 = arith.addf %2, %4 : vector<2x32xf32>
    %cst_5 = arith.constant 5.000000e-01 : f32
    %6 = vector.broadcast %cst_5 : f32 to vector<2x32xf32>
    %7 = arith.mulf %6, %5 : vector<2x32xf32>
    %8 = math.tanh %7 : vector<2x32xf32>
    %cst_6 = arith.constant 5.000000e-01 : f32
    %9 = vector.broadcast %cst_6 : f32 to vector<2x32xf32>
    %10 = arith.mulf %9, %8 : vector<2x32xf32>
    %cst_7 = arith.constant 5.000000e-01 : f32
    %11 = vector.broadcast %cst_7 : f32 to vector<2x32xf32>
    %12 = arith.addf %10, %11 : vector<2x32xf32>
    %13 = arith.truncf %12 : vector<2x32xf32> to vector<2x32xbf16>
    %c0_8 = arith.constant 0 : index
    %c0_9 = arith.constant 0 : index
    %14 = vector.load %arg4[%c0_8, %c0_9] : memref<32x128xbf16, #tpu.memory_space<vmem>>, vector<32x128xbf16>
    %cst_10 = arith.constant dense<0.000000e+00> : vector<2x128xf32>
    %15 = tpu.matmul %13, %14, %cst_10 {dimension_numbers = #tpu.dot_dimension_numbers<[1], [0], [0], [1], [0, 0, 1, 1], [], []>} : vector<2x32xbf16>, vector<32x128xbf16>, vector<2x128xf32> -> vector<2x128xf32>
    %c0_11 = arith.constant 0 : index
    %c0_12 = arith.constant 0 : index
    %16 = vector.load %arg5[%c0_11, %c0_12] : memref<1x128xf32, #tpu.memory_space<vmem>>, vector<1x128xf32>
    %17 = vector.broadcast %16 : vector<1x128xf32> to vector<2x128xf32>
    %18 = arith.addf %15, %17 : vector<2x128xf32>
    %c0_13 = arith.constant 0 : index
    %c0_14 = arith.constant 0 : index
    %19 = vector.load %arg6[%c0_13, %c0_14] : memref<2x128xf32, #tpu.memory_space<vmem>>, vector<2x128xf32>
    tpu.vector_store %arg6[%c0_13, %c0_14], %18 {strides = array<i32>} : memref<2x128xf32, #tpu.memory_space<vmem>>, vector<2x128xf32>,
    return
  }
  func.func @transform_0(%arg0: i32) -> (i32, i32) {
    %c0_i32 = arith.constant 0 : i32
    %c0_i32_0 = arith.constant 0 : i32
    return %arg0, %c0_i32 : i32, i32
  }
  func.func @transform_1(%arg0: i32) -> (i32, i32) {
    %c0_i32 = arith.constant 0 : i32
    %c0_i32_0 = arith.constant 0 : i32
    %c0_i32_1 = arith.constant 0 : i32
    return %c0_i32, %c0_i32_0 : i32, i32
  }
  func.func @transform_2(%arg0: i32) -> (i32, i32) {
    %c0_i32 = arith.constant 0 : i32
    %c0_i32_0 = arith.constant 0 : i32
    %c0_i32_1 = arith.constant 0 : i32
    return %c0_i32, %c0_i32_0 : i32, i32
  }
  func.func @transform_3(%arg0: i32) -> (i32, i32) {
    %c0_i32 = arith.constant 0 : i32
    %c0_i32_0 = arith.constant 0 : i32
    %c0_i32_1 = arith.constant 0 : i32
    return %c0_i32, %c0_i32_0 : i32, i32
  }
  func.func @transform_4(%arg0: i32) -> (i32, i32) {
    %c0_i32 = arith.constant 0 : i32
    %c0_i32_0 = arith.constant 0 : i32
    %c0_i32_1 = arith.constant 0 : i32
    return %c0_i32, %c0_i32_0 : i32, i32
  }
  func.func @transform_5(%arg0: i32) -> (i32, i32) {
    %c0_i32 = arith.constant 0 : i32
    %c0_i32_0 = arith.constant 0 : i32
    return %arg0, %c0_i32 : i32, i32
  }
}

</mosaic_0001>

<bundles_post_ra>
// kernel: _perceptron_call.1
= control target key start
LH: loop header
LB: loop body
LE: loop exit
PB: predicated region body
PF: predicated region fallthrough
CT: control target
= control target key end

     0   :  { %vm35_vm0 = vcmask 1041408   ;;  %v222_v1 = vmov 0.0   ;;  %vm223_vm1 = vmmov 0   ;;  %vm31_vm2 = vcmask 31744   ;;  %s285_s0 = inlined_call_operand.vmem [shape: bf16[2,4], index: 0, kind: input, shape index: {}]   ;;  %s286_s1 = inlined_call_operand.vmem [shape: bf16[4,32], index: 1, kind: input, shape index: {}]   ;;  %s287_s2 = inlined_call_operand.vmem [shape: f32[1,32], index: 2, kind: input, shape index: {}]   ;;  %s288_s3 = inlined_call_operand.vmem [shape: bf16[32,128], index: 3, kind: input, shape index: {}]   ;;  %s289_s4 = inlined_call_operand.vmem [shape: f32[1,128], index: 4, kind: input, shape index: {}]   ;;  %s290_s5 = inlined_call_operand.hbm [shape: f32[2,128], index: 5, kind: output, shape index: {}]  }
   0x1   :  { %v23_v0 = vld [vmem:[%s286_s1] sm:$0x3]  ;;  %177 = vmatprep.subr.bf16.mxu0 %v222_v1  ;;  %179 = vmatprep.mubr.msk.bf16.mxu0 %vm223_vm1, %v222_v1 }
   0x2   :  { %v37_v2 = vsel %vm35_vm0, %v23_v0, 0  ;;  %v22_v3 = vld [vmem:[%s285_s0] sm:$0x1]  ;;  %183 = vmatprep.subr.bf16.mxu1 %v222_v1  ;;  %187 = vmatprep.mubr.msk.bf16.mxu1 %vm223_vm1, %v222_v1 }
   0x3   :  { %178 = vmatpush3.bf16.msra.mxu0 %v37_v2 }
   0x4   :  { %10 = vsyncpa [#allocation3], 0  ;;  %v194_v4 = vld [vmem:[%s288_s3] sm:$0xff]   ;;  %v195_v5 = vld [vmem:[%s288_s3 + $0x8] sm:$0xff]   ;;  %vm107_vm3 = vcmask 261120   ;;  %s224_s27 = smov [#allocation2]  }
   0x5   :  { %184 = vmatpush3.bf16.msra.mxu1 %v194_v4  ;;  %v166_v6 = vld [vmem:[%s287_s2] ss:$0 sm:$0xff]  ;;  %s158_s28 = sshll.u32 %s224_s27, 4  ;;  %s159_s28 = int_to_ptr.vmem [resolvable:$true] %s158_s28 }
   0x6   :  { %180 = vmatmul.mubr.msk.bf16.vlgmr.msra.gmra.mrb[0].mxu0 %vm31_vm2, %v22_v3  ;;  %185 = vmatprep.subr.bf16.mxu1 %v222_v1  ;;  %v168_v17 = vld [vmem:[%s289_s4] ss:$0 sm:$0xff]  ;;  %s198_s2 = scalar_lea.vmem %s159_s28, 32  ;;  %p203_p1 = scmp.lt.s32.totalorder %s159_s28, %s159_s28 }
   0x7   :  { %p199_p0 = scmp.ne.s32.totalorder %s159_s28, %s198_s2  ;;  %p204_p2 = scmp.lt.s32.totalorder %s198_s2, %s198_s2 }
   0x9   :  { %186 = vmatpush3.bf16.msra.mxu1 %v195_v5  ;;  %p205_p3 = por %p204_p2, %p203_p1 }
   0xb   :  { %p206_p4 = pnand %p205_p3, %p199_p0 }
  0xd9   :  { %v73_v7 = vpop.f32.mrb[0].mxu0 }
  0xda   :  { %v74_v8 = vadd.f32 %v166_v6, %v73_v7  ;;  %v181_v9 = vpop.f32.mrb[1].mxu0 }
  0xdb   :  { %v76_v10 = vpop.f32.mrb[2].mxu0 }
  0xdc   :  { %v79_v11 = vmul.f32 0.5, %v74_v8  ;;  %v182_v12 = vpop.f32.mrb[3].mxu0 }
  0xde   :  { %196 = vtanh.f32 %v79_v11 }
  0xe8   :  { %v197_v13 = vpop.eup %196 }
  0xe9   :  { %v81_v14 = vmul.f32 0.5, %v197_v13 }
  0xeb   :  { %v82_v15 = vadd.f32 0.5, %v81_v14 }
  0xed   :  { %v83_v16 = vpack.c.bf16 %v82_v15, %v82_v15 }
  0xef   :  { %188 = vmatmul.mubr.msk.bf16.vlgmr.msra.gmra.mrb[0].mxu1 %vm107_vm3, %v83_v16 }
 0x1c2   :  { %v145_v18 = vpop.f32.mrb[0].mxu1 }
 0x1c3   :  { %v146_v19 = vadd.f32 %v168_v17, %v145_v18  ;;  %v189_v20 = vpop.f32.mrb[1].mxu1 }
 0x1c4   :  { %v148_v21 = vpop.f32.mrb[2].mxu1 }
 0x1c5   :  { %151 = vst [vmem:[#allocation2] sm:$0x3] %v146_v19  ;;  %v190_v22 = vpop.f32.mrb[3].mxu1 }
 0x1c6   :  { %209 = shalt.err (!%p206_p4)
}
 0x1c7   :  { %s210_s4 = scalar_lea.hbm %s290_s5, 32 }
 0x1c8   :  { %p211_p5 = scmp.ne.s32.totalorder %s290_s5, %s210_s4  ;;  %p214_p6 = scmp.lt.u32.totalorder %s210_s4, %s290_s5 }
 0x1ca   :  { %p216_p7 = pnand %p214_p6, %p211_p5 }
 0x1cc   :  { %219 = shalt.err (!%p216_p7)
}
 0x1cd   :  { %161 = dma.vmem_to_hbm [thread:$0]  %s159_s28, 32, %s290_s5, [#allocation3]  }
 0x1ce   :  { %220 = dma.done.wait [#allocation3], 32  }
 0x1cf   :  { %221 = vsyncadd [#allocation3], 4294967264 }
 0x1d0   :  { %165 = vsyncpa [#allocation3], 1 }

// kernel: _perceptron_call.1
= control target key start
LH: loop header
LB: loop body
LE: loop exit
PB: predicated region body
PF: predicated region fallthrough
CT: control target
= control target key end

     0   :  { %vm35_vm0 = vcmask 1041408   ;;  %v222_v1 = vmov 0.0   ;;  %vm223_vm1 = vmmov 0   ;;  %vm31_vm2 = vcmask 31744   ;;  %s285_s0 = inlined_call_operand.vmem [shape: bf16[2,4], index: 0, kind: input, shape index: {}]   ;;  %s286_s1 = inlined_call_operand.vmem [shape: bf16[4,32], index: 1, kind: input, shape index: {}]   ;;  %s287_s2 = inlined_call_operand.vmem [shape: f32[1,32], index: 2, kind: input, shape index: {}]   ;;  %s288_s3 = inlined_call_operand.vmem [shape: bf16[32,128], index: 3, kind: input, shape index: {}]   ;;  %s289_s4 = inlined_call_operand.vmem [shape: f32[1,128], index: 4, kind: input, shape index: {}]   ;;  %s290_s5 = inlined_call_operand.hbm [shape: f32[2,128], index: 5, kind: output, shape index: {}]  }
   0x1   :  { %v23_v0 = vld [vmem:[%s286_s1] sm:$0x3]  ;;  %177 = vmatprep.subr.bf16.mxu0 %v222_v1  ;;  %179 = vmatprep.mubr.msk.bf16.mxu0 %vm223_vm1, %v222_v1 }
   0x2   :  { %v37_v2 = vsel %vm35_vm0, %v23_v0, 0  ;;  %v22_v3 = vld [vmem:[%s285_s0] sm:$0x1]  ;;  %183 = vmatprep.subr.bf16.mxu1 %v222_v1  ;;  %187 = vmatprep.mubr.msk.bf16.mxu1 %vm223_vm1, %v222_v1 }
   0x3   :  { %178 = vmatpush3.bf16.msra.mxu0 %v37_v2 }
   0x4   :  { %10 = vsyncpa [#allocation3], 0  ;;  %v194_v4 = vld [vmem:[%s288_s3] sm:$0xff]   ;;  %v195_v5 = vld [vmem:[%s288_s3 + $0x8] sm:$0xff]   ;;  %vm107_vm3 = vcmask 261120   ;;  %s224_s27 = smov [#allocation2]  }
   0x5   :  { %184 = vmatpush3.bf16.msra.mxu1 %v194_v4  ;;  %v166_v6 = vld [vmem:[%s287_s2] ss:$0 sm:$0xff]  ;;  %s158_s28 = sshll.u32 %s224_s27, 4  ;;  %s159_s28 = int_to_ptr.vmem [resolvable:$true] %s158_s28 }
   0x6   :  { %180 = vmatmul.mubr.msk.bf16.vlgmr.msra.gmra.mrb[0].mxu0 %vm31_vm2, %v22_v3  ;;  %185 = vmatprep.subr.bf16.mxu1 %v222_v1  ;;  %v168_v17 = vld [vmem:[%s289_s4] ss:$0 sm:$0xff]  ;;  %s198_s2 = scalar_lea.vmem %s159_s28, 32  ;;  %p203_p1 = scmp.lt.s32.totalorder %s159_s28, %s159_s28 }
   0x7   :  { %p199_p0 = scmp.ne.s32.totalorder %s159_s28, %s198_s2  ;;  %p204_p2 = scmp.lt.s32.totalorder %s198_s2, %s198_s2 }
   0x9   :  { %186 = vmatpush3.bf16.msra.mxu1 %v195_v5  ;;  %p205_p3 = por %p204_p2, %p203_p1 }
   0xb   :  { %p206_p4 = pnand %p205_p3, %p199_p0 }
  0xd9   :  { %v73_v7 = vpop.f32.mrb[0].mxu0 }
  0xda   :  { %v74_v8 = vadd.f32 %v166_v6, %v73_v7  ;;  %v181_v9 = vpop.f32.mrb[1].mxu0 }
  0xdb   :  { %v76_v10 = vpop.f32.mrb[2].mxu0 }
  0xdc   :  { %v79_v11 = vmul.f32 0.5, %v74_v8  ;;  %v182_v12 = vpop.f32.mrb[3].mxu0 }
  0xde   :  { %196 = vtanh.f32 %v79_v11 }
  0xe8   :  { %v197_v13 = vpop.eup %196 }
  0xe9   :  { %v81_v14 = vmul.f32 0.5, %v197_v13 }
  0xeb   :  { %v82_v15 = vadd.f32 0.5, %v81_v14 }
  0xed   :  { %v83_v16 = vpack.c.bf16 %v82_v15, %v82_v15 }
  0xef   :  { %188 = vmatmul.mubr.msk.bf16.vlgmr.msra.gmra.mrb[0].mxu1 %vm107_vm3, %v83_v16 }
 0x1c2   :  { %v145_v18 = vpop.f32.mrb[0].mxu1 }
 0x1c3   :  { %v146_v19 = vadd.f32 %v168_v17, %v145_v18  ;;  %v189_v20 = vpop.f32.mrb[1].mxu1 }
 0x1c4   :  { %v148_v21 = vpop.f32.mrb[2].mxu1 }
 0x1c5   :  { %151 = vst [vmem:[#allocation2] sm:$0x3] %v146_v19  ;;  %v190_v22 = vpop.f32.mrb[3].mxu1 }
 0x1c6   :  { %209 = shalt.err (!%p206_p4)
}
 0x1c7   :  { %s210_s4 = scalar_lea.hbm %s290_s5, 32 }
 0x1c8   :  { %p211_p5 = scmp.ne.s32.totalorder %s290_s5, %s210_s4  ;;  %p214_p6 = scmp.lt.u32.totalorder %s210_s4, %s290_s5 }
 0x1ca   :  { %p216_p7 = pnand %p214_p6, %p211_p5 }
 0x1cc   :  { %219 = shalt.err (!%p216_p7)
}
 0x1cd   :  { %161 = dma.vmem_to_hbm [thread:$0]  %s159_s28, 32, %s290_s5, [#allocation3]  }
 0x1ce   :  { %220 = dma.done.wait [#allocation3], 32  }
 0x1cf   :  { %221 = vsyncadd [#allocation3], 4294967264 }
 0x1d0   :  { %165 = vsyncpa [#allocation3], 1 }

</bundles_post_ra>
